<compile_context>
chip_gen: v5e
topology: v5e:2x2
jax: 0.10.0
libtpu: 0.0.40
codegen_flags: <defaults>
</compile_context>

<pallas_src>
import functools

import jax
import jax.numpy as jnp
import numpy as np
from jax.experimental import pallas as pl
from jax.experimental.pallas import tpu as pltpu


# ----------------------------------------------------------------------------
# Pallas kernel: fused cross-entropy (ignore_index=-1) + smooth-L1 reduction
# ----------------------------------------------------------------------------
def _rpn_loss_kernel(s0_ref, s1_ref, lbl_ref, pred_ref, tgt_ref, out_ref,
                     ce_acc, cnt_acc, reg_acc, *, sigma2, hw, need_mask):
    k = pl.program_id(1)                       # inner (reduction) axis
    n_inner = pl.num_programs(1)

    @pl.when(k == 0)
    def _init():
        ce_acc[...] = jnp.zeros_like(ce_acc)
        cnt_acc[...] = jnp.zeros_like(cnt_acc)
        reg_acc[...] = jnp.zeros_like(reg_acc)

    a_dim, tile = lbl_ref.shape
    lbl = lbl_ref[...].astype(jnp.int32)                    # (A, T) in {-1,0,1}
    valid = lbl >= 0                                        # non-ignored anchors
    pos = lbl > 0                                           # positive anchors
    if need_mask:
        # Only emitted when the tiling does not divide HW (ragged last tile or
        # a phantom tile of the parallel split); full tilings skip this.
        g = pl.program_id(0) * n_inner + k                  # logical tile index
        col = jax.lax.broadcasted_iota(jnp.int32, (a_dim, tile), 1) + g * tile
        in_range = col < hw
        valid = jnp.logical_and(valid, in_range)
        pos = jnp.logical_and(pos, in_range)

    # --- 2-class cross entropy with ignore_index=-1 as softplus of the margin
    s0 = s0_ref[...].astype(jnp.float32)                    # class-0 logits
    s1 = s1_ref[...].astype(jnp.float32)                    # class-1 logits
    sgn = 1.0 - 2.0 * lbl.astype(jnp.float32)               # +1 if label 0, -1 if 1
    z = sgn * (s1 - s0)                                     # logit(other)-logit(target)
    ce = jnp.maximum(z, 0.0) + jnp.log(1.0 + jnp.exp(-jnp.abs(z)))
    ce_acc[...] += jnp.where(valid, ce, 0.0)
    cnt_acc[...] += valid.astype(jnp.float32)

    # --- smooth L1 on positive anchors; offsets are channel-major (4A, T),
    #     rows [c*A:(c+1)*A] are channel c, so each channel pairs with `pos`.
    inv_s2 = 1.0 / sigma2
    reg = jnp.zeros((a_dim, tile), jnp.float32)
    for c in range(4):
        p = pred_ref[c * a_dim:(c + 1) * a_dim, :].astype(jnp.float32)
        t = tgt_ref[c * a_dim:(c + 1) * a_dim, :].astype(jnp.float32)
        d = jnp.where(pos, p - t, 0.0)          # inside_weight masking
        ad = jnp.abs(d)
        reg = reg + jnp.where(ad < inv_s2,
                              (0.5 * sigma2) * d * d,
                              ad - 0.5 * inv_s2)
    reg_acc[...] += reg

    @pl.when(k == n_inner - 1)
    def _finalize():
        ce_sum = jnp.sum(ce_acc[...])
        reg_sum = jnp.sum(reg_acc[...])
        cnt_sum = jnp.sum(cnt_acc[...])
        lane = jax.lax.broadcasted_iota(jnp.int32, out_ref.shape, 2)
        out_ref[...] = jnp.where(lane == 0, ce_sum,
                       jnp.where(lane == 1, reg_sum,
                       jnp.where(lane == 2, cnt_sum, 0.0)))


def rpn_loss_pallas(s0, s1, labels, pred_cm, tgt_cm, sigma, tile_hw=8192):
    """s0/s1: (A,HW) bf16, labels: (A,HW) int8, pred_cm/tgt_cm: (4A,HW) bf16."""
    a_dim, hw = labels.shape
    if hw <= tile_hw:
        tile = hw                                   # full-extent block is legal
    else:
        tile = max(128, (tile_hw // 128) * 128)     # lane-dense multiple of 128
    n_tiles = pl.cdiv(hw, tile)
    n_outer = 2 if n_tiles >= 2 else 1              # use both TCs on v7x
    n_inner = pl.cdiv(n_tiles, n_outer)
    need_mask = (hw % tile != 0) or (n_outer * n_inner != n_tiles)

    def col_block(o, k):
        # Clamp the possible phantom tile of the parallel split; its lanes are
        # fully masked in-kernel so the duplicated data contributes zero.
        return jnp.minimum(o * n_inner + k, n_tiles - 1)

    kernel = functools.partial(_rpn_loss_kernel, sigma2=float(sigma) ** 2,
                               hw=hw, need_mask=need_mask)
    partials = pl.pallas_call(
        kernel,
        out_shape=jax.ShapeDtypeStruct((n_outer, 8, 128), jnp.float32),
        grid_spec=pltpu.PrefetchScalarGridSpec(
            num_scalar_prefetch=0,
            grid=(n_outer, n_inner),
            in_specs=[
                pl.BlockSpec((a_dim, tile), lambda o, k: (0, col_block(o, k))),
                pl.BlockSpec((a_dim, tile), lambda o, k: (0, col_block(o, k))),
                pl.BlockSpec((a_dim, tile), lambda o, k: (0, col_block(o, k))),
                pl.BlockSpec((4 * a_dim, tile), lambda o, k: (0, col_block(o, k))),
                pl.BlockSpec((4 * a_dim, tile), lambda o, k: (0, col_block(o, k))),
            ],
            out_specs=pl.BlockSpec((1, 8, 128), lambda o, k: (o, 0, 0)),
            scratch_shapes=[
                pltpu.VMEM((a_dim, tile), jnp.float32),   # CE partial sums
                pltpu.VMEM((a_dim, tile), jnp.float32),   # valid-count partials
                pltpu.VMEM((a_dim, tile), jnp.float32),   # smooth-L1 partials
            ],
        ),
        compiler_params=pltpu.CompilerParams(
            dimension_semantics=("parallel", "arbitrary"),
            vmem_limit_bytes=32 * 1024 * 1024),
    )(s0, s1, labels, pred_cm, tgt_cm)

    ce_tot = jnp.sum(partials[:, 0, 0])
    reg_tot = jnp.sum(partials[:, 0, 1])
    n_valid = jnp.maximum(jnp.sum(partials[:, 0, 2]), 1.0)
    return ce_tot / n_valid, reg_tot / n_valid


# ----------------------------------------------------------------------------
# Plain-JAX glue: anchor generation + (simplified) AnchorTargetCreator
# ----------------------------------------------------------------------------
def generate_anchors(feat_h, feat_w, stride, sizes):
    """Anchors in channel-major (a, h, w) order, boxes as (x1, y1, x2, y2)."""
    ys = (jnp.arange(feat_h, dtype=jnp.float32) + 0.5) * stride
    xs = (jnp.arange(feat_w, dtype=jnp.float32) + 0.5) * stride
    cy, cx = jnp.meshgrid(ys, xs, indexing="ij")            # (H, W)
    half = jnp.asarray(sizes, jnp.float32)[:, None, None] / 2.0   # (A, 1, 1)
    x1 = cx[None] - half
    y1 = cy[None] - half
    x2 = cx[None] + half
    y2 = cy[None] + half
    anchors = jnp.stack([x1, y1, x2, y2], axis=-1)          # (A, H, W, 4)
    return anchors.reshape(-1, 4)                           # (A*H*W, 4)


def _box_iou(a, b):
    area_a = (a[:, 2] - a[:, 0]) * (a[:, 3] - a[:, 1])
    area_b = (b[:, 2] - b[:, 0]) * (b[:, 3] - b[:, 1])
    lt = jnp.maximum(a[:, None, :2], b[None, :, :2])
    rb = jnp.minimum(a[:, None, 2:], b[None, :, 2:])
    wh = jnp.clip(rb - lt, 0.0)
    inter = wh[..., 0] * wh[..., 1]
    return inter / (area_a[:, None] + area_b[None, :] - inter)


def anchor_target_creator(anchors, gt_bboxes, img_h, img_w, num_anchor_types,
                          pos_thresh=0.7, neg_thresh=0.3):
    """anchors: (N,4) in (a,h,w) order, N = A*HW.

    Returns labels (A, HW) int8 in {-1,0,1} and channel-major target offsets
    (4A, HW) bf16 (row = c*A + a) matching the kernel layout.
    """
    n = anchors.shape[0]
    hw = n // num_anchor_types

    inside = ((anchors[:, 0] >= 0.0) & (anchors[:, 1] >= 0.0)
              & (anchors[:, 2] <= float(img_w)) & (anchors[:, 3] <= float(img_h)))
    ious = _box_iou(anchors, gt_bboxes)                     # (N, M)
    max_iou = ious.max(axis=1)
    argmax_gt = ious.argmax(axis=1)
    gt_max_iou = ious.max(axis=0)                           # (M,)

    label = jnp.full((n,), -1.0, jnp.float32)
    label = jnp.where(max_iou < neg_thresh, 0.0, label)
    is_gt_argmax = jnp.any((ious == gt_max_iou[None, :])
                           & (gt_max_iou[None, :] > 0.0), axis=1)
    label = jnp.where(is_gt_argmax, 1.0, label)
    label = jnp.where(max_iou >= pos_thresh, 1.0, label)
    label = jnp.where(inside, label, -1.0)
    # TODO(synk): random positive/negative subsampling to n_sample anchors is
    #             data-dependent and skipped; deterministic matching only.

    gt = gt_bboxes[argmax_gt]                               # (N, 4)
    aw = anchors[:, 2] - anchors[:, 0]
    ah = anchors[:, 3] - anchors[:, 1]
    ax = anchors[:, 0] + 0.5 * aw
    ay = anchors[:, 1] + 0.5 * ah
    gw = jnp.maximum(gt[:, 2] - gt[:, 0], 1e-6)             # guard degenerate GT
    gh = jnp.maximum(gt[:, 3] - gt[:, 1], 1e-6)
    gx = gt[:, 0] + 0.5 * gw
    gy = gt[:, 1] + 0.5 * gh
    dx = ((gx - ax) / aw).reshape(num_anchor_types, hw)
    dy = ((gy - ay) / ah).reshape(num_anchor_types, hw)
    dw = jnp.log(gw / aw).reshape(num_anchor_types, hw)
    dh = jnp.log(gh / ah).reshape(num_anchor_types, hw)
    tgt = jnp.stack([dx, dy, dw, dh], axis=0)               # (4, A, HW)
    tgt = tgt.reshape(4 * num_anchor_types, hw).astype(jnp.bfloat16)
    labels = label.reshape(num_anchor_types, hw).astype(jnp.int8)
    return labels, tgt


def _prepare_kernel_inputs(anchors_of_img, predicted_scores, predicted_offsets,
                           target_bboxs, img_height, img_width):
    """Cast + relayout to sublane/lane-dense kernel inputs (bf16 / int8)."""
    two_a, fh, fw = predicted_scores.shape
    a_dim = two_a // 2
    hw = fh * fw

    labels, tgt_cm = anchor_target_creator(
        anchors_of_img, target_bboxs, img_height, img_width, a_dim)

    # PyTorch channel layout is [a0_c0, a0_c1, a1_c0, ...]; split into the two
    # class planes (pure slice) and cast to bf16.
    sc = predicted_scores.reshape(a_dim, 2, hw)
    s0 = sc[:, 0, :].astype(jnp.bfloat16)
    s1 = sc[:, 1, :].astype(jnp.bfloat16)
    # Offsets: (4A,H,W) -> channel-major (4A,HW) with row = c*A + a, bf16.
    pred_cm = (predicted_offsets.reshape(a_dim, 4, hw)
               .transpose(1, 0, 2).reshape(4 * a_dim, hw).astype(jnp.bfloat16))
    return s0, s1, labels, pred_cm, tgt_cm


def rpn_loss(anchors_of_img, predicted_scores, predicted_offsets,
             target_bboxs, img_height, img_width, sigma, tile_hw=8192):
    """Mirrors RPNLoss.forward for a single image.

    predicted_scores: (2A, Hf, Wf), predicted_offsets: (4A, Hf, Wf),
    anchors_of_img: (A*Hf*Wf, 4) in (a, h, w) order.
    """
    s0, s1, labels, pred_cm, tgt_cm = _prepare_kernel_inputs(
        anchors_of_img, predicted_scores, predicted_offsets,
        target_bboxs, img_height, img_width)
    # TODO(synk): the `target_labels is None` early return is data-dependent;
    #             the kernel instead clamps the valid-count denominator to 1.
    return rpn_loss_pallas(s0, s1, labels, pred_cm, tgt_cm, sigma,
                           tile_hw=tile_hw)


# ----------------------------------------------------------------------------
# Pure-JAX reference (for correctness check) -- same bf16/int8 inputs
# ----------------------------------------------------------------------------
def _reference_loss(s0, s1, labels, pred_cm, tgt_cm, sigma):
    a_dim, hw = labels.shape
    lbl = labels.astype(jnp.int32)
    valid = lbl >= 0
    pos = lbl > 0
    logits = jnp.stack([s0.astype(jnp.float32), s1.astype(jnp.float32)], axis=-1)
    logp = jax.nn.log_softmax(logits, axis=-1)
    tgt_idx = jnp.clip(lbl, 0, 1)
    ce = -jnp.take_along_axis(logp, tgt_idx[..., None], axis=-1)[..., 0]
    n_valid = jnp.maximum(jnp.sum(valid.astype(jnp.float32)), 1.0)
    cls_loss = jnp.sum(jnp.where(valid, ce, 0.0)) / n_valid

    pred = pred_cm.astype(jnp.float32).reshape(4, a_dim, hw)
    tgt = tgt_cm.astype(jnp.float32).reshape(4, a_dim, hw)
    diff = jnp.where(pos[None], pred - tgt, 0.0)
    sigma2 = sigma ** 2
    ad = jnp.abs(diff)
    sl1 = jnp.where(ad < 1.0 / sigma2, 0.5 * sigma2 * diff * diff,
                    ad - 0.5 / sigma2)
    reg_loss = jnp.sum(sl1) / n_valid
    return cls_loss, reg_loss


if __name__ == "__main__":
    key = jax.random.PRNGKey(0)
    sigma = 3.0                 # config.RPN.RPN_SIGMA
    A = 4                       # anchors per location
    stride = 4
    anchor_sizes = [12.0, 20.0, 28.0, 40.0]

    # (feat_h, feat_w, tile_hw): single tile / 2-tile ragged parallel split /
    # 3-tile split exercising the phantom-tile clamp.
    configs = [(12, 20, 4096), (12, 20, 128), (12, 32, 128)]

    for feat_h, feat_w, tile_hw in configs:
        img_h, img_w = feat_h * stride, feat_w * stride
        cfg_key = jax.random.fold_in(key, feat_h * 1000 + feat_w)
        k1, k2, k3, k4 = jax.random.split(cfg_key, 4)

        predicted_scores = jax.random.normal(k1, (2 * A, feat_h, feat_w),
                                             jnp.float32)
        predicted_offsets = 0.1 * jax.random.normal(
            k2, (4 * A, feat_h, feat_w), jnp.float32)

        # 3 ground-truth boxes (x1, y1, x2, y2) fully inside the image.
        cx = jax.random.uniform(k3, (3, 1), minval=0.25 * img_w,
                                maxval=0.75 * img_w)
        cy = jax.random.uniform(k4, (3, 1), minval=0.3 * img_h,
                                maxval=0.7 * img_h)
        half = jnp.array([[10.0], [12.0], [8.0]], jnp.float32)
        target_bboxs = jnp.concatenate([cx - half, cy - half, cx + half,
                                        cy + half], axis=1)

        anchors = generate_anchors(feat_h, feat_w, stride, anchor_sizes)

        # Pure-JAX reference on the exact kernel inputs (bf16/int8).
        s0, s1, labels, pred_cm, tgt_cm = _prepare_kernel_inputs(
            anchors, predicted_scores, predicted_offsets, target_bboxs,
            img_h, img_w)
        cls_r, reg_r = _reference_loss(s0, s1, labels, pred_cm, tgt_cm, sigma)

        cls_loss, reg_loss = rpn_loss(anchors, predicted_scores,
                                      predicted_offsets, target_bboxs,
                                      img_h, img_w, sigma, tile_hw=tile_hw)
        cls_loss = jax.block_until_ready(cls_loss)
        reg_loss = jax.block_until_ready(reg_loss)
        np.testing.assert_allclose(np.asarray(cls_loss), np.asarray(cls_r),
                                   rtol=1e-4, atol=1e-5)
        np.testing.assert_allclose(np.asarray(reg_loss), np.asarray(reg_r),
                                   rtol=1e-4, atol=1e-5)

    print("KERNEL_OK")
</pallas_src>

<mosaic_0001>
module attributes {stable_mosaic.version = 11 : i64} {
  func.func @_rpn_loss_kernel(%arg0: i32, %arg1: i32, %arg2: memref<4x240xbf16, #tpu.memory_space<vmem>>, %arg3: memref<4x240xbf16, #tpu.memory_space<vmem>>, %arg4: memref<4x240xi8, #tpu.memory_space<vmem>>, %arg5: memref<16x240xbf16, #tpu.memory_space<vmem>>, %arg6: memref<16x240xbf16, #tpu.memory_space<vmem>>, %arg7: memref<1x8x128xf32, #tpu.memory_space<vmem>>, %arg8: memref<4x240xf32, #tpu.memory_space<vmem>>, %arg9: memref<4x240xf32, #tpu.memory_space<vmem>>, %arg10: memref<4x240xf32, #tpu.memory_space<vmem>>) attributes {dimension_semantics = [#tpu.dimension_semantics<parallel>, #tpu.dimension_semantics<arbitrary>], iteration_bounds = array<i64: 1, 1>, scalar_prefetch = 0 : i64, scratch_operands = 3 : i64, tpu.core_type = #tpu.core_type<tc>, window_params = [{transform_indices = @transform_0, window_bounds = array<i64: 4, 240>}, {transform_indices = @transform_1, window_bounds = array<i64: 4, 240>}, {transform_indices = @transform_2, window_bounds = array<i64: 4, 240>}, {transform_indices = @transform_3, window_bounds = array<i64: 16, 240>}, {transform_indices = @transform_4, window_bounds = array<i64: 16, 240>}, {transform_indices = @transform_5, window_bounds = array<i64: 1, 8, 128>}]} {
    %c0_i32 = arith.constant 0 : i32
    %0 = arith.cmpi eq, %arg1, %c0_i32 : i32
    %1 = arith.extui %0 : i1 to i32
    %c0_i32_0 = arith.constant 0 : i32
    %2 = arith.cmpi ne, %1, %c0_i32_0 : i32
    scf.if %2 {
      %cst_57 = arith.constant 0.000000e+00 : f32
      %115 = vector.broadcast %cst_57 : f32 to vector<4x240xf32>
      %c0_58 = arith.constant 0 : index
      %c0_59 = arith.constant 0 : index
      %116 = vector.load %arg8[%c0_58, %c0_59] : memref<4x240xf32, #tpu.memory_space<vmem>>, vector<4x240xf32>
      tpu.vector_store %arg8[%c0_58, %c0_59], %115 {strides = array<i32>} : memref<4x240xf32, #tpu.memory_space<vmem>>, vector<4x240xf32>,
      %cst_60 = arith.constant 0.000000e+00 : f32
      %117 = vector.broadcast %cst_60 : f32 to vector<4x240xf32>
      %c0_61 = arith.constant 0 : index
      %c0_62 = arith.constant 0 : index
      %118 = vector.load %arg9[%c0_61, %c0_62] : memref<4x240xf32, #tpu.memory_space<vmem>>, vector<4x240xf32>
      tpu.vector_store %arg9[%c0_61, %c0_62], %117 {strides = array<i32>} : memref<4x240xf32, #tpu.memory_space<vmem>>, vector<4x240xf32>,
      %cst_63 = arith.constant 0.000000e+00 : f32
      %119 = vector.broadcast %cst_63 : f32 to vector<4x240xf32>
      %c0_64 = arith.constant 0 : index
      %c0_65 = arith.constant 0 : index
      %120 = vector.load %arg10[%c0_64, %c0_65] : memref<4x240xf32, #tpu.memory_space<vmem>>, vector<4x240xf32>
      tpu.vector_store %arg10[%c0_64, %c0_65], %119 {strides = array<i32>} : memref<4x240xf32, #tpu.memory_space<vmem>>, vector<4x240xf32>,
    } else {
    }
    %c0 = arith.constant 0 : index
    %c0_1 = arith.constant 0 : index
    %3 = vector.load %arg4[%c0, %c0_1] : memref<4x240xi8, #tpu.memory_space<vmem>>, vector<4x240xi8>
    %4 = arith.extsi %3 : vector<4x240xi8> to vector<4x240xi32>
    %c0_i32_2 = arith.constant 0 : i32
    %5 = vector.broadcast %c0_i32_2 : i32 to vector<4x240xi32>
    %6 = arith.cmpi sge, %4, %5 : vector<4x240xi32>
    %c0_i32_3 = arith.constant 0 : i32
    %7 = vector.broadcast %c0_i32_3 : i32 to vector<4x240xi32>
    %8 = arith.cmpi sgt, %4, %7 : vector<4x240xi32>
    %c0_4 = arith.constant 0 : index
    %c0_5 = arith.constant 0 : index
    %9 = vector.load %arg2[%c0_4, %c0_5] : memref<4x240xbf16, #tpu.memory_space<vmem>>, vector<4x240xbf16>
    %10 = arith.extf %9 : vector<4x240xbf16> to vector<4x240xf32>
    %c0_6 = arith.constant 0 : index
    %c0_7 = arith.constant 0 : index
    %11 = vector.load %arg3[%c0_6, %c0_7] : memref<4x240xbf16, #tpu.memory_space<vmem>>, vector<4x240xbf16>
    %12 = arith.extf %11 : vector<4x240xbf16> to vector<4x240xf32>
    %13 = arith.sitofp %4 : vector<4x240xi32> to vector<4x240xf32>
    %cst = arith.constant 2.000000e+00 : f32
    %14 = vector.broadcast %cst : f32 to vector<4x240xf32>
    %15 = arith.mulf %14, %13 : vector<4x240xf32>
    %cst_8 = arith.constant 1.000000e+00 : f32
    %16 = vector.broadcast %cst_8 : f32 to vector<4x240xf32>
    %17 = arith.subf %16, %15 : vector<4x240xf32>
    %18 = arith.subf %12, %10 : vector<4x240xf32>
    %19 = arith.mulf %17, %18 : vector<4x240xf32>
    %cst_9 = arith.constant 0.000000e+00 : f32
    %20 = vector.broadcast %cst_9 : f32 to vector<4x240xf32>
    %21 = arith.maximumf %19, %20 : vector<4x240xf32>
    %22 = math.absf %19 : vector<4x240xf32>
    %cst_10 = arith.constant 0.000000e+00 : f32
    %23 = vector.broadcast %cst_10 : f32 to vector<4x240xf32>
    %24 = arith.subf %23, %22 : vector<4x240xf32>
    %25 = math.exp %24 : vector<4x240xf32>
    %cst_11 = arith.constant 1.000000e+00 : f32
    %26 = vector.broadcast %cst_11 : f32 to vector<4x240xf32>
    %27 = arith.addf %26, %25 : vector<4x240xf32>
    %28 = math.log %27 : vector<4x240xf32>
    %29 = arith.addf %21, %28 : vector<4x240xf32>
    %c0_12 = arith.constant 0 : index
    %c0_13 = arith.constant 0 : index
    %30 = vector.load %arg8[%c0_12, %c0_13] : memref<4x240xf32, #tpu.memory_space<vmem>>, vector<4x240xf32>
    %cst_14 = arith.constant 0.000000e+00 : f32
    %31 = vector.broadcast %cst_14 : f32 to vector<4x240xf32>
    %32 = arith.select %6, %29, %31 : vector<4x240xi1>, vector<4x240xf32>
    %33 = arith.addf %30, %32 : vector<4x240xf32>
    %c0_15 = arith.constant 0 : index
    %c0_16 = arith.constant 0 : index
    %34 = vector.load %arg8[%c0_15, %c0_16] : memref<4x240xf32, #tpu.memory_space<vmem>>, vector<4x240xf32>
    tpu.vector_store %arg8[%c0_15, %c0_16], %33 {strides = array<i32>} : memref<4x240xf32, #tpu.memory_space<vmem>>, vector<4x240xf32>,
    %c0_17 = arith.constant 0 : index
    %c0_18 = arith.constant 0 : index
    %35 = vector.load %arg9[%c0_17, %c0_18] : memref<4x240xf32, #tpu.memory_space<vmem>>, vector<4x240xf32>
    %36 = arith.extui %6 : vector<4x240xi1> to vector<4x240xi32>
    %37 = arith.sitofp %36 : vector<4x240xi32> to vector<4x240xf32>
    %38 = arith.addf %35, %37 : vector<4x240xf32>
    %c0_19 = arith.constant 0 : index
    %c0_20 = arith.constant 0 : index
    %39 = vector.load %arg9[%c0_19, %c0_20] : memref<4x240xf32, #tpu.memory_space<vmem>>, vector<4x240xf32>
    tpu.vector_store %arg9[%c0_19, %c0_20], %38 {strides = array<i32>} : memref<4x240xf32, #tpu.memory_space<vmem>>, vector<4x240xf32>,
    %cst_21 = arith.constant 0.000000e+00 : f32
    %40 = vector.broadcast %cst_21 : f32 to vector<4x240xf32>
    %c0_22 = arith.constant 0 : index
    %c0_23 = arith.constant 0 : index
    %41 = vector.load %arg5[%c0_22, %c0_23] : memref<16x240xbf16, #tpu.memory_space<vmem>>, vector<4x240xbf16>
    %42 = arith.extf %41 : vector<4x240xbf16> to vector<4x240xf32>
    %c0_24 = arith.constant 0 : index
    %c0_25 = arith.constant 0 : index
    %43 = vector.load %arg6[%c0_24, %c0_25] : memref<16x240xbf16, #tpu.memory_space<vmem>>, vector<4x240xbf16>
    %44 = arith.extf %43 : vector<4x240xbf16> to vector<4x240xf32>
    %45 = arith.subf %42, %44 : vector<4x240xf32>
    %cst_26 = arith.constant 0.000000e+00 : f32
    %46 = vector.broadcast %cst_26 : f32 to vector<4x240xf32>
    %47 = arith.select %8, %45, %46 : vector<4x240xi1>, vector<4x240xf32>
    %48 = math.absf %47 : vector<4x240xf32>
    %cst_27 = arith.constant 0.111111112 : f32
    %49 = vector.broadcast %cst_27 : f32 to vector<4x240xf32>
    %50 = arith.cmpf olt, %48, %49 : vector<4x240xf32>
    %cst_28 = arith.constant 4.500000e+00 : f32
    %51 = vector.broadcast %cst_28 : f32 to vector<4x240xf32>
    %52 = arith.mulf %51, %47 : vector<4x240xf32>
    %53 = arith.mulf %52, %47 : vector<4x240xf32>
    %cst_29 = arith.constant 0.055555556 : f32
    %54 = vector.broadcast %cst_29 : f32 to vector<4x240xf32>
    %55 = arith.subf %48, %54 : vector<4x240xf32>
    %56 = arith.select %50, %53, %55 : vector<4x240xi1>, vector<4x240xf32>
    %57 = arith.addf %40, %56 : vector<4x240xf32>
    %c4 = arith.constant 4 : index
    %c0_30 = arith.constant 0 : index
    %58 = vector.load %arg5[%c4, %c0_30] : memref<16x240xbf16, #tpu.memory_space<vmem>>, vector<4x240xbf16>
    %59 = arith.extf %58 : vector<4x240xbf16> to vector<4x240xf32>
    %c4_31 = arith.constant 4 : index
    %c0_32 = arith.constant 0 : index
    %60 = vector.load %arg6[%c4_31, %c0_32] : memref<16x240xbf16, #tpu.memory_space<vmem>>, vector<4x240xbf16>
    %61 = arith.extf %60 : vector<4x240xbf16> to vector<4x240xf32>
    %62 = arith.subf %59, %61 : vector<4x240xf32>
    %cst_33 = arith.constant 0.000000e+00 : f32
    %63 = vector.broadcast %cst_33 : f32 to vector<4x240xf32>
    %64 = arith.select %8, %62, %63 : vector<4x240xi1>, vector<4x240xf32>
    %65 = math.absf %64 : vector<4x240xf32>
    %cst_34 = arith.constant 0.111111112 : f32
    %66 = vector.broadcast %cst_34 : f32 to vector<4x240xf32>
    %67 = arith.cmpf olt, %65, %66 : vector<4x240xf32>
    %cst_35 = arith.constant 4.500000e+00 : f32
    %68 = vector.broadcast %cst_35 : f32 to vector<4x240xf32>
    %69 = arith.mulf %68, %64 : vector<4x240xf32>
    %70 = arith.mulf %69, %64 : vector<4x240xf32>
    %cst_36 = arith.constant 0.055555556 : f32
    %71 = vector.broadcast %cst_36 : f32 to vector<4x240xf32>
    %72 = arith.subf %65, %71 : vector<4x240xf32>
    %73 = arith.select %67, %70, %72 : vector<4x240xi1>, vector<4x240xf32>
    %74 = arith.addf %57, %73 : vector<4x240xf32>
    %c8 = arith.constant 8 : index
    %c0_37 = arith.constant 0 : index
    %75 = vector.load %arg5[%c8, %c0_37] : memref<16x240xbf16, #tpu.memory_space<vmem>>, vector<4x240xbf16>
    %76 = arith.extf %75 : vector<4x240xbf16> to vector<4x240xf32>
    %c8_38 = arith.constant 8 : index
    %c0_39 = arith.constant 0 : index
    %77 = vector.load %arg6[%c8_38, %c0_39] : memref<16x240xbf16, #tpu.memory_space<vmem>>, vector<4x240xbf16>
    %78 = arith.extf %77 : vector<4x240xbf16> to vector<4x240xf32>
    %79 = arith.subf %76, %78 : vector<4x240xf32>
    %cst_40 = arith.constant 0.000000e+00 : f32
    %80 = vector.broadcast %cst_40 : f32 to vector<4x240xf32>
    %81 = arith.select %8, %79, %80 : vector<4x240xi1>, vector<4x240xf32>
    %82 = math.absf %81 : vector<4x240xf32>
    %cst_41 = arith.constant 0.111111112 : f32
    %83 = vector.broadcast %cst_41 : f32 to vector<4x240xf32>
    %84 = arith.cmpf olt, %82, %83 : vector<4x240xf32>
    %cst_42 = arith.constant 4.500000e+00 : f32
    %85 = vector.broadcast %cst_42 : f32 to vector<4x240xf32>
    %86 = arith.mulf %85, %81 : vector<4x240xf32>
    %87 = arith.mulf %86, %81 : vector<4x240xf32>
    %cst_43 = arith.constant 0.055555556 : f32
    %88 = vector.broadcast %cst_43 : f32 to vector<4x240xf32>
    %89 = arith.subf %82, %88 : vector<4x240xf32>
    %90 = arith.select %84, %87, %89 : vector<4x240xi1>, vector<4x240xf32>
    %91 = arith.addf %74, %90 : vector<4x240xf32>
    %c12 = arith.constant 12 : index
    %c0_44 = arith.constant 0 : index
    %92 = vector.load %arg5[%c12, %c0_44] : memref<16x240xbf16, #tpu.memory_space<vmem>>, vector<4x240xbf16>
    %93 = arith.extf %92 : vector<4x240xbf16> to vector<4x240xf32>
    %c12_45 = arith.constant 12 : index
    %c0_46 = arith.constant 0 : index
    %94 = vector.load %arg6[%c12_45, %c0_46] : memref<16x240xbf16, #tpu.memory_space<vmem>>, vector<4x240xbf16>
    %95 = arith.extf %94 : vector<4x240xbf16> to vector<4x240xf32>
    %96 = arith.subf %93, %95 : vector<4x240xf32>
    %cst_47 = arith.constant 0.000000e+00 : f32
    %97 = vector.broadcast %cst_47 : f32 to vector<4x240xf32>
    %98 = arith.select %8, %96, %97 : vector<4x240xi1>, vector<4x240xf32>
    %99 = math.absf %98 : vector<4x240xf32>
    %cst_48 = arith.constant 0.111111112 : f32
    %100 = vector.broadcast %cst_48 : f32 to vector<4x240xf32>
    %101 = arith.cmpf olt, %99, %100 : vector<4x240xf32>
    %cst_49 = arith.constant 4.500000e+00 : f32
    %102 = vector.broadcast %cst_49 : f32 to vector<4x240xf32>
    %103 = arith.mulf %102, %98 : vector<4x240xf32>
    %104 = arith.mulf %103, %98 : vector<4x240xf32>
    %cst_50 = arith.constant 0.055555556 : f32
    %105 = vector.broadcast %cst_50 : f32 to vector<4x240xf32>
    %106 = arith.subf %99, %105 : vector<4x240xf32>
    %107 = arith.select %101, %104, %106 : vector<4x240xi1>, vector<4x240xf32>
    %108 = arith.addf %91, %107 : vector<4x240xf32>
    %c0_51 = arith.constant 0 : index
    %c0_52 = arith.constant 0 : index
    %109 = vector.load %arg10[%c0_51, %c0_52] : memref<4x240xf32, #tpu.memory_space<vmem>>, vector<4x240xf32>
    %110 = arith.addf %109, %108 : vector<4x240xf32>
    %c0_53 = arith.constant 0 : index
    %c0_54 = arith.constant 0 : index
    %111 = vector.load %arg10[%c0_53, %c0_54] : memref<4x240xf32, #tpu.memory_space<vmem>>, vector<4x240xf32>
    tpu.vector_store %arg10[%c0_53, %c0_54], %110 {strides = array<i32>} : memref<4x240xf32, #tpu.memory_space<vmem>>, vector<4x240xf32>,
    %c0_i32_55 = arith.constant 0 : i32
    %112 = arith.cmpi eq, %arg1, %c0_i32_55 : i32
    %113 = arith.extui %112 : i1 to i32
    %c0_i32_56 = arith.constant 0 : i32
    %114 = arith.cmpi ne, %113, %c0_i32_56 : i32
    scf.if %114 {
      %c0_57 = arith.constant 0 : index
      %c0_58 = arith.constant 0 : index
      %115 = vector.load %arg8[%c0_57, %c0_58] : memref<4x240xf32, #tpu.memory_space<vmem>>, vector<4x240xf32>
      %116 = vector.shape_cast %115 : vector<4x240xf32> to vector<1x4x240xf32>
      %cst_59 = arith.constant dense<0.000000e+00> : vector<1xf32>
      %117 = vector.multi_reduction <add>, %116, %cst_59 [1, 2] : vector<1x4x240xf32> to vector<1xf32>
      %118 = vector.shape_cast %117 : vector<1xf32> to vector<1x1x1xf32>
      %119 = vector.extract %118[0, 0, 0] : f32 from vector<1x1x1xf32>
      %c0_60 = arith.constant 0 : index
      %c0_61 = arith.constant 0 : index
      %120 = vector.load %arg10[%c0_60, %c0_61] : memref<4x240xf32, #tpu.memory_space<vmem>>, vector<4x240xf32>
      %121 = vector.shape_cast %120 : vector<4x240xf32> to vector<1x4x240xf32>
      %cst_62 = arith.constant dense<0.000000e+00> : vector<1xf32>
      %122 = vector.multi_reduction <add>, %121, %cst_62 [1, 2] : vector<1x4x240xf32> to vector<1xf32>
      %123 = vector.shape_cast %122 : vector<1xf32> to vector<1x1x1xf32>
      %124 = vector.extract %123[0, 0, 0] : f32 from vector<1x1x1xf32>
      %c0_63 = arith.constant 0 : index
      %c0_64 = arith.constant 0 : index
      %125 = vector.load %arg9[%c0_63, %c0_64] : memref<4x240xf32, #tpu.memory_space<vmem>>, vector<4x240xf32>
      %126 = vector.shape_cast %125 : vector<4x240xf32> to vector<1x4x240xf32>
      %cst_65 = arith.constant dense<0.000000e+00> : vector<1xf32>
      %127 = vector.multi_reduction <add>, %126, %cst_65 [1, 2] : vector<1x4x240xf32> to vector<1xf32>
      %128 = vector.shape_cast %127 : vector<1xf32> to vector<1x1x1xf32>
      %129 = vector.extract %128[0, 0, 0] : f32 from vector<1x1x1xf32>
      %130 = tpu.iota {dimensions = array<i32: 2>} : vector<1x8x128xi32>
      %c0_i32_66 = arith.constant 0 : i32
      %131 = vector.broadcast %c0_i32_66 : i32 to vector<1x8x128xi32>
      %132 = arith.cmpi eq, %130, %131 : vector<1x8x128xi32>
      %c1_i32 = arith.constant 1 : i32
      %133 = vector.broadcast %c1_i32 : i32 to vector<1x8x128xi32>
      %134 = arith.cmpi eq, %130, %133 : vector<1x8x128xi32>
      %c2_i32 = arith.constant 2 : i32
      %135 = vector.broadcast %c2_i32 : i32 to vector<1x8x128xi32>
      %136 = arith.cmpi eq, %130, %135 : vector<1x8x128xi32>
      %cst_67 = arith.constant 0.000000e+00 : f32
      %137 = vector.broadcast %129 : f32 to vector<1x8x128xf32>
      %138 = vector.broadcast %cst_67 : f32 to vector<1x8x128xf32>
      %139 = arith.select %136, %137, %138 : vector<1x8x128xi1>, vector<1x8x128xf32>
      %140 = vector.broadcast %124 : f32 to vector<1x8x128xf32>
      %141 = arith.select %134, %140, %139 : vector<1x8x128xi1>, vector<1x8x128xf32>
      %142 = vector.broadcast %119 : f32 to vector<1x8x128xf32>
      %143 = arith.select %132, %142, %141 : vector<1x8x128xi1>, vector<1x8x128xf32>
      %c0_68 = arith.constant 0 : index
      %c0_69 = arith.constant 0 : index
      %c0_70 = arith.constant 0 : index
      %144 = vector.load %arg7[%c0_68, %c0_69, %c0_70] : memref<1x8x128xf32, #tpu.memory_space<vmem>>, vector<1x8x128xf32>
      tpu.vector_store %arg7[%c0_68, %c0_69, %c0_70], %143 {strides = array<i32>} : memref<1x8x128xf32, #tpu.memory_space<vmem>>, vector<1x8x128xf32>,
    } else {
    }
    return
  }
  func.func @transform_0(%arg0: i32, %arg1: i32) -> (i32, i32) {
    %c1_i32 = arith.constant 1 : i32
    %0 = arith.muli %arg0, %c1_i32 : i32
    %1 = arith.addi %0, %arg1 : i32
    %c0_i32 = arith.constant 0 : i32
    %2 = arith.minsi %1, %c0_i32 : i32
    %c0_i32_0 = arith.constant 0 : i32
    %c0_i32_1 = arith.constant 0 : i32
    return %c0_i32_0, %2 : i32, i32
  }
  func.func @transform_1(%arg0: i32, %arg1: i32) -> (i32, i32) {
    %c1_i32 = arith.constant 1 : i32
    %0 = arith.muli %arg0, %c1_i32 : i32
    %1 = arith.addi %0, %arg1 : i32
    %c0_i32 = arith.constant 0 : i32
    %2 = arith.minsi %1, %c0_i32 : i32
    %c0_i32_0 = arith.constant 0 : i32
    %c0_i32_1 = arith.constant 0 : i32
    return %c0_i32_0, %2 : i32, i32
  }
  func.func @transform_2(%arg0: i32, %arg1: i32) -> (i32, i32) {
    %c1_i32 = arith.constant 1 : i32
    %0 = arith.muli %arg0, %c1_i32 : i32
    %1 = arith.addi %0, %arg1 : i32
    %c0_i32 = arith.constant 0 : i32
    %2 = arith.minsi %1, %c0_i32 : i32
    %c0_i32_0 = arith.constant 0 : i32
    %c0_i32_1 = arith.constant 0 : i32
    return %c0_i32_0, %2 : i32, i32
  }
  func.func @transform_3(%arg0: i32, %arg1: i32) -> (i32, i32) {
    %c1_i32 = arith.constant 1 : i32
    %0 = arith.muli %arg0, %c1_i32 : i32
    %1 = arith.addi %0, %arg1 : i32
    %c0_i32 = arith.constant 0 : i32
    %2 = arith.minsi %1, %c0_i32 : i32
    %c0_i32_0 = arith.constant 0 : i32
    %c0_i32_1 = arith.constant 0 : i32
    return %c0_i32_0, %2 : i32, i32
  }
  func.func @transform_4(%arg0: i32, %arg1: i32) -> (i32, i32) {
    %c1_i32 = arith.constant 1 : i32
    %0 = arith.muli %arg0, %c1_i32 : i32
    %1 = arith.addi %0, %arg1 : i32
    %c0_i32 = arith.constant 0 : i32
    %2 = arith.minsi %1, %c0_i32 : i32
    %c0_i32_0 = arith.constant 0 : i32
    %c0_i32_1 = arith.constant 0 : i32
    return %c0_i32_0, %2 : i32, i32
  }
  func.func @transform_5(%arg0: i32, %arg1: i32) -> (i32, i32, i32) {
    %c0_i32 = arith.constant 0 : i32
    %c0_i32_0 = arith.constant 0 : i32
    %c0_i32_1 = arith.constant 0 : i32
    return %arg0, %c0_i32, %c0_i32_0 : i32, i32, i32
  }
}

</mosaic_0001>

<bundles_post_ra>
// kernel: tpu_custom_call.1
= control target key start
LH: loop header
LB: loop body
LE: loop exit
PB: predicated region body
PF: predicated region fallthrough
CT: control target
= control target key end

     0   :  { %10 = vsyncpa [#allocation6], 0  ;;  %s660_s0 = inlined_call_operand.hbm [shape: bf16[4,240], index: 0, kind: input, shape index: {}]   ;;  %s661_s1 = inlined_call_operand.hbm [shape: bf16[4,240], index: 1, kind: input, shape index: {}]   ;;  %s662_s2 = inlined_call_operand.hbm [shape: s8[4,240], index: 2, kind: input, shape index: {}]   ;;  %s663_s3 = inlined_call_operand.hbm [shape: bf16[16,240], index: 3, kind: input, shape index: {}]   ;;  %s664_s4 = inlined_call_operand.hbm [shape: bf16[16,240], index: 4, kind: input, shape index: {}]   ;;  %s665_s5 = inlined_call_operand.hbm [shape: f32[1,8,128], index: 5, kind: output, shape index: {}]  }
   0x1   :  { %11 = vsyncpa [#allocation9], 0 }
   0x2   :  { %12 = vsyncpa [#allocation12], 0  ;;  %s42_s20 = sshll.u32 %s661_s1, 4  ;;  %s43_s20 = int_to_ptr.hbm [resolvable:$true] %s42_s20 }
   0x3   :  { %13 = vsyncpa [#allocation7], 0  ;;  %s555_s21 = smov [#allocation8]   ;;  %s74_s25 = sshll.u32 %s663_s3, 4  ;;  %s75_s25 = int_to_ptr.hbm [resolvable:$true] %s74_s25 }
   0x4   :  { %s44_s22 = sshll.u32 %s555_s21, 4  ;;  %s556_s26 = smov [#allocation11]   ;;  %s45_s22 = int_to_ptr.vmem [resolvable:$true] %s44_s22 }
   0x5   :  { %47 = dma.hbm_to_vmem [thread:$0]  %s43_s20, 64, %s45_s22, [#allocation9]  }
   0x6   :  { %s76_s27 = sshll.u32 %s556_s26, 4  ;;  %s557_s28 = smov 128   ;;  %s77_s27 = int_to_ptr.vmem [resolvable:$true] %s76_s27 }
   0x7   :  { %s558_s29 = smov 8   ;;  %s25_s1 = sshll.u32 %s660_s0, 4  ;;  %s26_s1 = int_to_ptr.hbm [resolvable:$true] %s25_s1 }
   0x8   :  { %82 = dma.hbm_to_vmem [thread:$0]  %s75_s25, 256, %s77_s27, [#allocation12], %s557_s28, %s557_s28, %s558_s29  }
   0x9   :  { %s559_s7 = smov [#allocation5]   ;;  %s58_s3 = sshll.u32 %s662_s2, 4  ;;  %s59_s3 = int_to_ptr.hbm [resolvable:$true] %s58_s3 }
   0xa   :  { %s27_s8 = sshll.u32 %s559_s7, 4  ;;  %s560_s11 = smov [#allocation10]   ;;  %s28_s8 = int_to_ptr.vmem [resolvable:$true] %s27_s8 }
   0xb   :  { %30 = dma.hbm_to_vmem [thread:$0]  %s26_s1, 64, %s28_s8, [#allocation6]  }
   0xc   :  { %s60_s12 = sshll.u32 %s560_s11, 4  ;;  %s93_s15 = sshll.u32 %s664_s4, 4  ;;  %s61_s12 = int_to_ptr.vmem [resolvable:$true] %s60_s12  ;;  %s94_s15 = int_to_ptr.hbm [resolvable:$true] %s93_s15 }
   0xd   :  { %63 = dma.hbm_to_vmem [thread:$0]  %s59_s3, 32, %s61_s12, [#allocation9]  }
   0xe   :  { %s561_s0 = smov [#allocation13]  }
   0xf   :  { %s95_s16 = sshll.u32 %s561_s0, 4  ;;  %s96_s16 = int_to_ptr.vmem [resolvable:$true] %s95_s16 }
  0x10   :  { %101 = dma.hbm_to_vmem [thread:$0]  %s94_s15, 256, %s96_s16, [#allocation12], %s557_s28, %s557_s28, %s558_s29  }
  0x11   :  { %547 = dma.done.wait [#allocation6], 64  }
  0x12   :  { %548 = vsyncadd [#allocation6], 4294967232 }
  0x13   :  { %549 = dma.done.wait [#allocation9], 96  }
  0x14   :  { %550 = vsyncadd [#allocation9], 4294967200 }
  0x15   :  { %551 = dma.done.wait [#allocation12], 512  }
  0x16   :  { %552 = vsyncadd [#allocation12], 4294966784  ;;  %vm146_vm0 = vcmask 1043456   ;;  %vm147_vm1 = vcmask 916484   ;;  %v562_v1 = vmov 0.0   ;;  %vm288_vm9 = vcmask 912384  }
  0x17   :  { %vm610_vm2 = vmor %vm147_vm1, %vm146_vm0  ;;  %v152_v2 = vld [vmem:[#allocation10] sm:$0x3]  ;;  %v156_v3 = vld [vmem:[#allocation5] sm:$0xf]  ;;  %s563_s17 = smov [#allocation14]   ;;  %s357_s22 = sshll.u32 %s665_s5, 4  ;;  %s358_s22 = int_to_ptr.hbm [resolvable:$true] %s357_s22 }
  0x18   :  { %149 = vst.msk [vmem:[#allocation2] sm:$0xff] %vm610_vm2, %v562_v1  ;;  %v158_v4 = vld [vmem:[#allocation8] sm:$0xf]  ;;  %v620_v5 = vunpack.c.0.s8 %v152_v2  ;;  %v157_v6 = vunpack.c.l.bf16 %v156_v3  ;;  %v186_v8 = vld [vmem:[#allocation11] sm:$0x33]  ;;  %s355_s18 = sshll.u32 %s563_s17, 4  ;;  %s356_s18 = int_to_ptr.vmem [resolvable:$true] %s355_s18 }
  0x19   :  { %150 = vst.msk [vmem:[#allocation3] sm:$0xff] %vm610_vm2, %v562_v1  ;;  %v159_v7 = vunpack.c.l.bf16 %v158_v4  ;;  %v189_v9 = vld [vmem:[#allocation13] sm:$0x33]  ;;  %v207_v10 = vld [vmem:[#allocation11] sm:$0xcc]  ;;  %v187_v11 = vunpack.c.l.bf16 %v186_v8  ;;  %v188_v12 = vunpack.c.h.bf16 %v186_v8 }
  0x1a   :  { %151 = vst.msk [vmem:[#allocation4] sm:$0xff] %vm610_vm2, %v562_v1  ;;  %v190_v13 = vunpack.c.l.bf16 %v189_v9  ;;  %v191_v14 = vunpack.c.h.bf16 %v189_v9  ;;  %v210_v15 = vld [vmem:[#allocation13] sm:$0xcc]  ;;  %vm155_vm3 = vcmp.gt.s32.totalorder %v620_v5, 0  ;;  %v160_v16 = vcvt.s32.f32 %v620_v5  ;;  %v230_v18 = vld [vmem:[#allocation11 + $0x8] sm:$0x33] }
  0x1b   :  { %v163_v17 = vsub.f32 %v159_v7, %v157_v6  ;;  %v233_v19 = vld [vmem:[#allocation13 + $0x8] sm:$0x33]  ;;  %v208_v22 = vunpack.c.l.bf16 %v207_v10  ;;  %v209_v23 = vunpack.c.h.bf16 %v207_v10  ;;  %v211_v25 = vunpack.c.l.bf16 %v210_v15  ;;  %v251_v35 = vld [vmem:[#allocation11 + $0x8] sm:$0xcc]  ;;  %v254_v36 = vld [vmem:[#allocation13 + $0x8] sm:$0xcc] }
  0x1c   :  { %v192_v20 = vsub.f32 %v187_v11, %v190_v13  ;;  %v193_v21 = vsub.f32 %v188_v12, %v191_v14  ;;  %v161_v24 = vmul.f32 2.0, %v160_v16  ;;  %v212_v26 = vunpack.c.h.bf16 %v210_v15 }
  0x1d   :  { %v231_v27 = vunpack.c.l.bf16 %v230_v18  ;;  %v232_v29 = vunpack.c.h.bf16 %v230_v18  ;;  %v234_v30 = vunpack.c.l.bf16 %v233_v19  ;;  %v235_v31 = vunpack.c.h.bf16 %v233_v19 }
  0x1e   :  { %v196_v28 = vrot.slane %v193_v21, 4  ;;  %vm154_vm4 = vcmp.ge.s32.totalorder %v620_v5, 0  ;;  %v162_v32 = vsub.f32 1.0, %v161_v24  ;;  %v213_v33 = vsub.f32 %v208_v22, %v211_v25 }
  0x1f   :  { %v214_v34 = vsub.f32 %v209_v23, %v212_v26  ;;  %v379_v38 = vsel %vm154_vm4, 1.0, %v562_v1  ;;  %v237_v40 = vsub.f32 %v232_v29, %v235_v31  ;;  %v236_v44 = vsub.f32 %v231_v27, %v234_v30  ;;  %v174_v30 = vld [vmem:[#allocation2] sm:$0xff] }
  0x20   :  { %v181_v37 = vld [vmem:[#allocation3] sm:$0xff]  ;;  %v197_v39 = vsel %vm146_vm0, %v192_v20, %v196_v28  ;;  %v164_v41 = vmul.f32 %v163_v17, %v162_v32  ;;  %217 = vst.sshfl [vmem:[#allocation1] sm:$0xff pattern:$0x75316420] %v213_v33  ;;  %v252_v45 = vunpack.c.l.bf16 %v251_v35  ;;  %v255_v46 = vunpack.c.l.bf16 %v254_v36 }
  0x21   :  { %v184_v42 = vadd.f32 %v379_v38, %v181_v37  ;;  %v199_v43 = vsel %vm155_vm3, %v197_v39, 0.0  ;;  %218 = vst.sshfl [vmem:[#allocation1 + $0x8] sm:$0xff pattern:$0x75316420] %v214_v34  ;;  %v240_v48 = vrot.slane %v237_v40, 4  ;;  %v253_v49 = vunpack.c.h.bf16 %v251_v35  ;;  %v274_v26 = vld [vmem:[#allocation4] sm:$0xff] }
  0x22   :  { %v166_v47 = vand.u32 2147483647, %v164_v41  ;;  %v256_v50 = vunpack.c.h.bf16 %v254_v36  ;;  %v200_v51 = vand.u32 2147483647, %v199_v43  ;;  %v202_v54 = vmul.f32 4.5, %v199_v43 }
  0x23   :  { %185 = vst.msk [vmem:[#allocation3] sm:$0xff] %vm610_vm2, %v184_v42  ;;  %v241_v53 = vsel %vm146_vm0, %v236_v44, %v240_v48  ;;  %v257_v56 = vsub.f32 %v252_v45, %v255_v46  ;;  %v165_v23 = vmax.f32 %v164_v41, 0.0 }
  0x24   :  { %v167_v52 = vsub.f32 0.0, %v166_v47  ;;  %v243_v55 = vsel %vm155_vm3, %v241_v53, 0.0  ;;  %v258_v58 = vsub.f32 %v253_v49, %v256_v50  ;;  %vm635_vm5 = vcmp.lt.f32.partialorder %v200_v51, 0.11111111 }
  0x25   :  { %v380_v60 = vadd.f32 -0.055555556, %v200_v51  ;;  %v244_v62 = vand.u32 2147483647, %v243_v55  ;;  %v203_v63 = vmul.f32 %v202_v54, %v199_v43  ;;  %v246_v2 = vmul.f32 4.5, %v243_v55 }
  0x26   :  { %v168_v57 = vmul.f32 1.442695, %v167_v52 }
  0x27   :  { %v205_v8 = vsel %vm635_vm5, %v203_v63, %v380_v60  ;;  %v247_v9 = vmul.f32 %v246_v2, %v243_v55  ;;  %v382_v10 = vadd.f32 -0.055555556, %v244_v62  ;;  %vm245_vm7 = vcmp.lt.f32.partialorder %v244_v62, 0.11111111 }
  0x28   :  { %399 = vpow2.f32 %v168_v57  ;;  %v220_v61 = vld [vmem:[#allocation1 + $0x1] ss:$2 sm:$0xff] }
  0x29   :  { %v222_v1 = vsel %vm155_vm3, %v220_v61, 0.0  ;;  %261 = vst.sshfl [vmem:[#allocation1] sm:$0xff pattern:$0x75316420] %v257_v56  ;;  %v249_v15 = vsel %vm245_vm7, %v247_v9, %v382_v10  ;;  %v338_v9 = vlaneseq }
  0x2a   :  { %v223_v3 = vand.u32 2147483647, %v222_v1  ;;  %v225_v4 = vmul.f32 4.5, %v222_v1  ;;  %262 = vst.sshfl [vmem:[#allocation1 + $0x8] sm:$0xff pattern:$0x75316420] %v258_v58 }
  0x2b   :  { %v319_v40 = vld [vmem:[#allocation3] sm:$0xff]  ;;  %v339_v10 = vand.u32 127, %v338_v9 }
  0x2c   :  { %vm224_vm6 = vcmp.lt.f32.partialorder %v223_v3, 0.11111111  ;;  %v226_v6 = vmul.f32 %v225_v4, %v222_v1  ;;  %v381_v7 = vadd.f32 -0.055555556, %v223_v3 }
  0x2d   :  { %vm342_vm10 = vcmp.eq.s32.totalorder %v339_v10, 2  ;;  %vm341_vm11 = vcmp.eq.s32.totalorder %v339_v10, 1  ;;  %vm340_vm12 = vcmp.eq.s32.totalorder %v339_v10, 0 }
  0x2e   :  { %v400_v11 = vpop.eup %399  ;;  %v228_v12 = vsel %vm224_vm6, %v226_v6, %v381_v7 }
  0x2f   :  { %v170_v13 = vadd.f32 1.0, %v400_v11  ;;  %v229_v14 = vadd.f32 %v228_v12, %v205_v8 }
  0x31   :  { %401 = vlog2.f32 %v170_v13  ;;  %v264_v16 = vld [vmem:[#allocation1 + $0x1] ss:$2 sm:$0xff]  ;;  %v250_v20 = vadd.f32 %v249_v15, %v229_v14 }
  0x32   :  { %v266_v17 = vsel %vm155_vm3, %v264_v16, 0.0 }
  0x33   :  { %v267_v18 = vand.u32 2147483647, %v266_v17  ;;  %v269_v19 = vmul.f32 4.5, %v266_v17 }
  0x35   :  { %vm268_vm8 = vcmp.lt.f32.partialorder %v267_v18, 0.11111111  ;;  %v270_v21 = vmul.f32 %v269_v19, %v266_v17  ;;  %v383_v22 = vadd.f32 -0.055555556, %v267_v18 }
  0x37   :  { %v402_v24 = vpop.eup %401  ;;  %v272_v25 = vsel %vm268_vm8, %v270_v21, %v383_v22 }
  0x38   :  { %v172_v27 = vmul.f32 0.6931472, %v402_v24  ;;  %v273_v28 = vadd.f32 %v272_v25, %v250_v20 }
  0x3a   :  { %v173_v29 = vadd.f32 %v172_v27, %v165_v23  ;;  %v275_v31 = vadd.f32 %v274_v26, %v273_v28 }
  0x3c   :  { %v175_v32 = vsel %vm154_vm4, %v173_v29, 0.0  ;;  %276 = vst.msk [vmem:[#allocation4] sm:$0xff] %vm610_vm2, %v275_v31 }
  0x3d   :  { %v176_v33 = vadd.f32 %v175_v32, %v174_v30 }
  0x3f   :  { %180 = vst.msk [vmem:[#allocation2] sm:$0xff] %vm610_vm2, %v176_v33 }
  0x43   :  { %v300_v35 = vld [vmem:[#allocation4] sm:$0xff] }
  0x46   :  { %v280_v34 = vld [vmem:[#allocation2] sm:$0xff] }
  0x47   :  { %282 = vst [vmem:[#allocation1] ss:$2 sm:$0xff] %v280_v34 }
  0x4e   :  { %v283_v36 = vld.sshfl [vmem:[#allocation1] sm:$0xff pattern:$0x75316420]  ;;  %v284_v37 = vld.sshfl [vmem:[#allocation1 + $0x8] sm:$0xff pattern:$0x75316420] }
  0x4f   :  { %v287_v38 = vsel %vm146_vm0, %v283_v36, 0.0  ;;  %v289_v39 = vsel %vm288_vm9, %v284_v37, 0.0  ;;  %302 = vst [vmem:[#allocation1] ss:$2 sm:$0xff] %v300_v35 }
  0x50   :  { %v290_v5 = vadd.f32 %v289_v39, %v287_v38 }
  0x52   :  { %291 = vadd.xlane.f32.xlu0 %v290_v5 }
  0x56   :  { %v303_v41 = vld.sshfl [vmem:[#allocation1] sm:$0xff pattern:$0x75316420]  ;;  %v304_v42 = vld.sshfl [vmem:[#allocation1 + $0x8] sm:$0xff pattern:$0x75316420] }
  0x57   :  { %v307_v43 = vsel %vm146_vm0, %v303_v41, 0.0  ;;  %v308_v0 = vsel %vm288_vm9, %v304_v42, 0.0  ;;  %321 = vst [vmem:[#allocation1] ss:$2 sm:$0xff] %v319_v40 }
  0x58   :  { %v309_v44 = vadd.f32 %v308_v0, %v307_v43 }
  0x5a   :  { %310 = vadd.xlane.f32.xlu0 %v309_v44 }
  0x5e   :  { %v322_v45 = vld.sshfl [vmem:[#allocation1] sm:$0xff pattern:$0x75316420]  ;;  %v323_v46 = vld.sshfl [vmem:[#allocation1 + $0x8] sm:$0xff pattern:$0x75316420] }
  0x5f   :  { %v326_v47 = vsel %vm146_vm0, %v322_v45, 0.0  ;;  %v327_v48 = vsel %vm288_vm9, %v323_v46, 0.0 }
  0x60   :  { %v328_v49 = vadd.f32 %v327_v48, %v326_v47 }
  0x62   :  { %329 = vadd.xlane.f32.xlu1 %v328_v49 }
  0xc5   :  { %v292_v50 = vpop.xlane.xlu0 %291 }
  0xc6   :  { %v293_v51 = vrot.slane %v292_v50, 4 }
  0xc8   :  { %v294_v52 = vadd.f32 %v293_v51, %v292_v50 }
  0xca   :  { %v295_v53 = vrot.slane %v294_v52, 2 }
  0xcc   :  { %v296_v54 = vadd.f32 %v295_v53, %v294_v52 }
  0xcd   :  { %v311_v55 = vpop.xlane.xlu0 %310 }
  0xce   :  { %v312_v56 = vrot.slane %v311_v55, 4  ;;  %v297_v57 = vrot.slane %v296_v54, 1 }
  0xd0   :  { %v313_v58 = vadd.f32 %v312_v56, %v311_v55  ;;  %v298_v59 = vadd.f32 %v297_v57, %v296_v54 }
  0xd2   :  { %v314_v60 = vrot.slane %v313_v58, 2  ;;  %384 = vpush %v298_v59 }
  0xd4   :  { %v315_v61 = vadd.f32 %v314_v60, %v313_v58 }
  0xd5   :  { %v330_v62 = vpop.xlane.xlu1 %329 }
  0xd6   :  { %v331_v63 = vrot.slane %v330_v62, 4  ;;  %v316_v1 = vrot.slane %v315_v61, 1 }
  0xd8   :  { %v332_v2 = vadd.f32 %v331_v63, %v330_v62  ;;  %v317_v3 = vadd.f32 %v316_v1, %v315_v61 }
  0xda   :  { %v333_v4 = vrot.slane %v332_v2, 2  ;;  %386 = vpush %v317_v3 }
  0xdc   :  { %v334_v6 = vadd.f32 %v333_v4, %v332_v2 }
  0xde   :  { %v335_v7 = vrot.slane %v334_v6, 1 }
  0xe0   :  { %v336_v8 = vadd.f32 %v335_v7, %v334_v6 }
  0xe2   :  { %388 = vpush %v336_v8 }
 0x103   :  { %s385_s2 = spop %384 }
 0x104   :  { %v347_v14 = vstv %s385_s2 }
 0x10b   :  { %s387_s4 = spop %386 }
 0x10c   :  { %v345_v12 = vstv %s387_s4 }
 0x113   :  { %s389_s19 = spop %388 }
 0x114   :  { %v343_v11 = vstv %s389_s19 }
 0x115   :  { %v344_v13 = vsel %vm342_vm10, %v343_v11, 0.0 }
 0x116   :  { %v346_v15 = vsel %vm341_vm11, %v345_v12, %v344_v13 }
 0x117   :  { %v348_v16 = vsel %vm340_vm12, %v347_v14, %v346_v15 }
 0x118   :  { %349 = vst [vmem:[#allocation14] sm:$0xff] %v348_v16 }
 0x119   :  { %360 = dma.vmem_to_hbm [thread:$0]  %s356_s18, 128, %s358_s22, [#allocation7]  }
 0x11a   :  { %553 = dma.done.wait [#allocation7], 128  }
 0x11b   :  { %554 = vsyncadd [#allocation7], 4294967168 }
 0x11c   :  { %365 = vsyncpa [#allocation6], 1 }
 0x11d   :  { %366 = vsyncpa [#allocation9], 1 }
 0x11e   :  { %367 = vsyncpa [#allocation12], 1 }
 0x11f   :  { %368 = vsyncpa [#allocation7], 1 }

</bundles_post_ra>
